<compile_context>
chip_gen: v7x
topology: tpu7x:2x2x1
jax: 0.10.0
libtpu: 0.0.40
codegen_flags: <defaults>
</compile_context>

<pallas_src>
import functools
import math

import jax
import jax.numpy as jnp
from jax.experimental import pallas as pl
from jax.experimental.pallas import tpu as pltpu

EPS = 1e-5          # BatchNorm eps
THR = 1e-5          # replace_denormals threshold
_ROW_TILE = 512     # rows per grid step for row-tiled matmul kernels (multiple of 8)
_EW_TILE = 1024     # rows per grid step for elementwise kernels
_VMEM_LIMIT = 32 * 1024 * 1024  # safe on v5e/v6e (128 MiB) and v7x (64 MiB physical)


# ------------------------------ small helpers ------------------------------

def _round_up(x, m):
    return (x + m - 1) // m * m


def _row_tiling(m, tm_max=_ROW_TILE):
    tm = min(tm_max, _round_up(m, 8))
    return tm, _round_up(m, tm)


def _pad_rows(x, mp):
    m = x.shape[0]
    return x if m == mp else jnp.pad(x, ((0, mp - m), (0, 0)))


def _cparams():
    return pltpu.CompilerParams(dimension_semantics=("parallel",),
                                vmem_limit_bytes=_VMEM_LIMIT)


def _fold_bn(g, b, rm, rv):
    s = g / jnp.sqrt(rv + EPS)
    return s, b - rm * s


# ------------------------------ kernel 1: 1x1 conv + folded BN (+ReLU) ------------------------------

def _mm_affine_kernel(x_ref, w_ref, s_ref, t_ref, o_ref, *, apply_relu):
    y = jnp.dot(x_ref[...], w_ref[...], preferred_element_type=jnp.float32)
    y = y * s_ref[...] + t_ref[...]
    if apply_relu:
        y = jnp.maximum(y, 0.0)
    o_ref[...] = y


def mm_affine(x, w, s, t, *, relu, use_pallas=True):
    """y = relu?((x @ w) * s + t)  with a 1-D row grid (double-buffered pipeline)."""
    m, k = x.shape
    co = w.shape[1]
    s2 = s.reshape(1, co).astype(jnp.float32)
    t2 = t.reshape(1, co).astype(jnp.float32)
    if not use_pallas:  # pure-JAX reference path
        y = (x @ w) * s2 + t2
        return jnp.maximum(y, 0.0) if relu else y
    tm, mp = _row_tiling(m)
    out = pl.pallas_call(
        functools.partial(_mm_affine_kernel, apply_relu=relu),
        out_shape=jax.ShapeDtypeStruct((mp, co), jnp.float32),
        grid=(mp // tm,),
        in_specs=[
            pl.BlockSpec((tm, k), lambda i: (i, 0)),
            pl.BlockSpec((k, co), lambda i: (0, 0)),    # weights resident
            pl.BlockSpec((1, co), lambda i: (0, 0)),
            pl.BlockSpec((1, co), lambda i: (0, 0)),
        ],
        out_specs=pl.BlockSpec((tm, co), lambda i: (i, 0)),
        compiler_params=_cparams(),
    )(_pad_rows(x, mp), w.astype(jnp.float32), s2, t2)
    return out[:m]


# ------------------------------ kernel 2: fused conv2 (3x3, s2) + conv_downsample ------------------------------

def _conv2_ds_kernel(ee_ref, eo_ref, oe_ref, oo_ref, xs_ref, w2_ref,
                     s2_ref, t2_ref, wd_ref, rmw0_ref, rmd_ref, invd_ref,
                     y2_ref, biased_ref, norm_ref, *, ho, wo):
    cin = xs_ref.shape[-1]
    # 4 parity-split views of the zero-padded activation (halo is built in).
    parity = {(0, 0): ee_ref[0], (0, 1): eo_ref[0],
              (1, 0): oe_ref[0], (1, 1): oo_ref[0]}
    acc = jnp.zeros(y2_ref.shape, jnp.float32)
    for kh in range(3):            # 9 accumulating taps, no im2col blow-up
        for kw in range(3):
            src = parity[(kh % 2, kw % 2)]
            dh, dw = kh // 2, kw // 2
            tap = src[dh:dh + ho, dw:dw + wo, :].reshape(ho * wo, cin)
            acc = acc + jnp.dot(tap, w2_ref[kh * 3 + kw],
                                preferred_element_type=jnp.float32)
    y2_ref[...] = jnp.maximum(acc * s2_ref[...] + t2_ref[...], 0.0)

    # residual 1x1 stride-2 conv (no bias) + eval batch_norm pieces
    yd = jnp.dot(xs_ref[...], wd_ref[...], preferred_element_type=jnp.float32)
    biased_ref[...] = yd - rmw0_ref[...]                     # residual - running_mean*w[0]
    norm_ref[...] = (yd - rmd_ref[...]) * invd_ref[...]      # eval BN, no affine


def conv2_ds(y1, x_sub, w2, s2, t2, wd, rmw0, rmd, invd, *, use_pallas=True):
    n, h, w, cin = y1.shape
    ho, wo = h // 2, w // 2
    cout = w2.shape[-1]
    s2r = s2.reshape(1, cout).astype(jnp.float32)
    t2r = t2.reshape(1, cout).astype(jnp.float32)
    rmw0r = rmw0.reshape(1, cout).astype(jnp.float32)
    rmdr = rmd.reshape(1, cout).astype(jnp.float32)
    invdr = invd.reshape(1, cout).astype(jnp.float32)
    yp = jnp.pad(y1, ((0, 0), (1, 1), (1, 1), (0, 0)))

    if not use_pallas:  # pure-JAX reference path (same tap order / math)
        acc = jnp.zeros((n, ho, wo, cout), jnp.float32)
        for kh in range(3):
            for kw in range(3):
                tap = yp[:, kh:kh + 2 * ho:2, kw:kw + 2 * wo:2, :]
                acc = acc + jnp.einsum("nhwc,cd->nhwd", tap, w2[kh, kw])
        y2 = jnp.maximum(acc * s2r + t2r, 0.0)
        yd = jnp.einsum("nhwc,cd->nhwd", x_sub, wd)
        return (y2.reshape(-1, cout), yd - rmw0r, (yd - rmdr) * invdr)

    assert h % 2 == 0 and w % 2 == 0, "Pallas conv2 path assumes even H, W"
    # Parity split (one 1x pass in XLA) -> in-kernel taps are contiguous slices.
    ee = yp[:, 0::2, 0::2, :]
    eo = yp[:, 0::2, 1::2, :]
    oe = yp[:, 1::2, 0::2, :]
    oo = yp[:, 1::2, 1::2, :]
    w2r = w2.reshape(9, cin, cout).astype(jnp.float32)
    xs2 = x_sub.reshape(n * ho * wo, cin)

    par_spec = pl.BlockSpec((1, ho + 1, wo + 1, cin), lambda b: (b, 0, 0, 0))
    xs_spec = pl.BlockSpec((ho * wo, cin), lambda b: (b, 0))
    vec_spec = pl.BlockSpec((1, cout), lambda b: (0, 0))
    row_out = pl.BlockSpec((ho * wo, cout), lambda b: (b, 0))
    out_sds = jax.ShapeDtypeStruct((n * ho * wo, cout), jnp.float32)

    y2, biased, norm = pl.pallas_call(
        functools.partial(_conv2_ds_kernel, ho=ho, wo=wo),
        out_shape=(out_sds, out_sds, out_sds),
        grid=(n,),
        in_specs=[par_spec, par_spec, par_spec, par_spec, xs_spec,
                  pl.BlockSpec((9, cin, cout), lambda b: (0, 0, 0)),
                  vec_spec, vec_spec,
                  pl.BlockSpec((cin, cout), lambda b: (0, 0)),
                  vec_spec, vec_spec, vec_spec],
        out_specs=(row_out, row_out, row_out),
        compiler_params=_cparams(),
    )(ee, eo, oe, oo, xs2, w2r, s2r, t2r, wd.astype(jnp.float32),
      rmw0r, rmdr, invdr)
    return (y2,
            biased.reshape(n, ho, wo, cout),
            norm.reshape(n, ho, wo, cout))


# ------------------------------ kernel 3: spectral recombination ------------------------------

def _spectral_kernel(bre_ref, bim_ref, nre_ref, nim_ref, ore_ref, oim_ref,
                     *, inv_sqrt_hw):
    # cos(phase)*amp = re_d * amp * rsqrt(re_d^2 + im^2);  sin(phase)*amp = im * ...
    re = bre_ref[...]
    im = bim_ref[...]
    re_d = jnp.where(jnp.logical_and(re < THR, re > -THR), THR, re)
    inv_r = jax.lax.rsqrt(re_d * re_d + im * im)          # EUP rsqrt (no sqrt+div)
    a2 = nre_ref[...] * nre_ref[...] + nim_ref[...] * nim_ref[...]
    a2 = jnp.where(jnp.logical_and(a2 < THR, a2 > -THR), THR, a2)
    scale = jnp.sqrt(a2) * inv_sqrt_hw * inv_r
    ore_ref[...] = re_d * scale
    oim_ref[...] = im * scale


def spectral(brf, nrf, *, inv_sqrt_hw, use_pallas=True):
    """phase(biased)/amp(norm) recombination; brf/nrf are complex (N, Ho, Wc, C)."""
    n, ho, wc, cout = brf.shape
    bre = brf.real.astype(jnp.float32)
    bim = brf.imag.astype(jnp.float32)
    nre = nrf.real.astype(jnp.float32)
    nim = nrf.imag.astype(jnp.float32)
    if not use_pallas:
        re_d = jnp.where((bre < THR) & (bre > -THR), THR, bre)
        inv_r = jax.lax.rsqrt(re_d * re_d + bim * bim)
        a2 = nre * nre + nim * nim
        a2 = jnp.where((a2 < THR) & (a2 > -THR), THR, a2)
        scale = jnp.sqrt(a2) * inv_sqrt_hw * inv_r
        return re_d * scale, bim * scale
    # Lane-dense flattening: last dim = Wc*C instead of C, row grid over N*Ho.
    rows, lanes = n * ho, wc * cout
    tm, mp = _row_tiling(rows, tm_max=_EW_TILE)
    flat = lambda a: _pad_rows(a.reshape(rows, lanes), mp)
    blk = pl.BlockSpec((tm, lanes), lambda i: (i, 0))
    ore, oim = pl.pallas_call(
        functools.partial(_spectral_kernel, inv_sqrt_hw=inv_sqrt_hw),
        out_shape=(jax.ShapeDtypeStruct((mp, lanes), jnp.float32),
                   jax.ShapeDtypeStruct((mp, lanes), jnp.float32)),
        grid=(mp // tm,),
        in_specs=[blk, blk, blk, blk],
        out_specs=(blk, blk),
        compiler_params=_cparams(),
    )(flat(bre), flat(bim), flat(nre), flat(nim))
    unflat = lambda a: a[:rows].reshape(n, ho, wc, cout)
    return unflat(ore), unflat(oim)


# ------------------------------ kernel 4: fused conv3 + BN + residual add + ReLU ------------------------------

def _mm_final_kernel(x_ref, w_ref, s_ref, t_ref, r_ref, g_ref, b_ref, o_ref):
    y = jnp.dot(x_ref[...], w_ref[...], preferred_element_type=jnp.float32)
    o_ref[...] = jnp.maximum(
        y * s_ref[...] + t_ref[...] + r_ref[...] * g_ref[...] + b_ref[...], 0.0)


def mm_final(x, w, s, t, res, gamma, beta, *, use_pallas=True):
    m, k = x.shape
    co = w.shape[1]
    s2 = s.reshape(1, co).astype(jnp.float32)
    t2 = t.reshape(1, co).astype(jnp.float32)
    g2 = gamma.reshape(1, co).astype(jnp.float32)
    b2 = beta.reshape(1, co).astype(jnp.float32)
    if not use_pallas:
        return jnp.maximum((x @ w) * s2 + t2 + res * g2 + b2, 0.0)
    tm, mp = _row_tiling(m)
    out = pl.pallas_call(
        _mm_final_kernel,
        out_shape=jax.ShapeDtypeStruct((mp, co), jnp.float32),
        grid=(mp // tm,),
        in_specs=[
            pl.BlockSpec((tm, k), lambda i: (i, 0)),
            pl.BlockSpec((k, co), lambda i: (0, 0)),
            pl.BlockSpec((1, co), lambda i: (0, 0)),
            pl.BlockSpec((1, co), lambda i: (0, 0)),
            pl.BlockSpec((tm, co), lambda i: (i, 0)),
            pl.BlockSpec((1, co), lambda i: (0, 0)),
            pl.BlockSpec((1, co), lambda i: (0, 0)),
        ],
        out_specs=pl.BlockSpec((tm, co), lambda i: (i, 0)),
        compiler_params=_cparams(),
    )(_pad_rows(x, mp), w.astype(jnp.float32), s2, t2, _pad_rows(res, mp), g2, b2)
    return out[:m]


# ------------------------------ forward (glue in plain JAX) ------------------------------

def downsample_layer_forward(x_nchw, p, *, use_pallas=True):
    x = jnp.transpose(x_nchw, (0, 2, 3, 1)).astype(jnp.float32)  # NHWC
    n, h, w, cin = x.shape
    cout = p["w3"].shape[0]
    ho, wo = h // 2, w // 2

    # Fold eval-BN and conv bias into a single per-channel (scale, shift).
    s1, t1 = _fold_bn(p["g1"], p["be1"], p["rm1"], p["rv1"])
    t1 = t1 + p["b1"] * s1
    s2, t2 = _fold_bn(p["g2"], p["be2"], p["rm2"], p["rv2"])
    t2 = t2 + p["b2"] * s2
    s3, t3 = _fold_bn(p["g3"], p["be3"], p["rm3"], p["rv3"])
    t3 = t3 + p["b3"] * s3

    # ---- conv1 (1x1) + bn + relu
    y1 = mm_affine(x.reshape(-1, cin), p["w1"], s1, t1,
                   relu=True, use_pallas=use_pallas).reshape(n, h, w, cin)

    # ---- fused: conv2 (3x3, s2) + bn + relu  AND  conv_downsample (1x1, s2) + bn stats
    wsm = jax.nn.softmax(p["ccw"] / 1e-6)          # zeros -> [0.5, 0.5]
    inv_d = 1.0 / jnp.sqrt(p["rvd"] + EPS)
    # TODO(synk): the stride-2 subsample could be folded into the kernel via strided
    # pl.ds reads; here it is a cheap 1/4-size XLA slice feeding the fused kernel.
    x_sub = x[:, ::2, ::2, :][:, :ho, :wo, :]
    y2, biased4, norm4 = conv2_ds(y1, x_sub, p["w2"], s2, t2, p["wd"],
                                  p["rmd"] * wsm[0], p["rmd"], inv_d,
                                  use_pallas=use_pallas)

    # ---- FFT glue (no Pallas FFT primitive)
    brf = jnp.fft.fft2(biased4, axes=(1, 2))       # norm='backward'
    nrf = jnp.fft.fft2(norm4, axes=(1, 2))
    wc = wo // 2 + 1                               # irfft2(s=(ho,wo)) keeps wo//2+1 cols
    ore, oim = spectral(brf[:, :, :wc, :], nrf[:, :, :wc, :],
                        inv_sqrt_hw=1.0 / math.sqrt(ho * wo), use_pallas=use_pallas)
    spec = ore + 1j * oim
    res = jnp.fft.irfft2(spec, s=(ho, wo), axes=(1, 2), norm="ortho")  # (N,Ho,Wo,Cout)

    # ---- fused: conv3 (1x1) + bn + residual*gamma + beta, relu
    out = mm_final(y2, p["w3"], s3, t3, res.reshape(-1, cout),
                   p["gd"], p["bed"], use_pallas=use_pallas)
    return jnp.transpose(out.reshape(n, ho, wo, cout), (0, 3, 1, 2))  # back to NCHW


# ------------------------------ parameters ------------------------------

def init_params(key, cin, cout):
    ks = jax.random.split(key, 24)
    nrm = lambda k, shape, s=0.1: s * jax.random.normal(k, shape, jnp.float32)
    p = {
        "w1": nrm(ks[0], (cin, cin), 0.3), "b1": nrm(ks[1], (cin,)),
        "w2": nrm(ks[2], (3, 3, cin, cout), 0.2), "b2": nrm(ks[3], (cout,)),
        "w3": nrm(ks[4], (cout, cout), 0.3), "b3": nrm(ks[5], (cout,)),
        "wd": nrm(ks[6], (cin, cout), 0.3),
        "g1": 1.0 + nrm(ks[7], (cin,)), "be1": nrm(ks[8], (cin,)),
        "rm1": nrm(ks[9], (cin,)),
        "rv1": 0.8 + 0.2 * jnp.abs(jax.random.normal(ks[10], (cin,), jnp.float32)),
        "g2": 1.0 + nrm(ks[11], (cout,)), "be2": nrm(ks[12], (cout,)),
        "rm2": nrm(ks[13], (cout,)),
        "rv2": 0.8 + 0.2 * jnp.abs(jax.random.normal(ks[14], (cout,), jnp.float32)),
        "g3": 1.0 + nrm(ks[15], (cout,)), "be3": nrm(ks[16], (cout,)),
        "rm3": nrm(ks[17], (cout,)),
        "rv3": 0.8 + 0.2 * jnp.abs(jax.random.normal(ks[18], (cout,), jnp.float32)),
        "gd": 1.0 + nrm(ks[19], (cout,)), "bed": nrm(ks[20], (cout,)),
        "rmd": nrm(ks[21], (cout,)),
        "rvd": 0.8 + 0.2 * jnp.abs(jax.random.normal(ks[22], (cout,), jnp.float32)),
        "ccw": jnp.zeros((2,), jnp.float32),  # nn.Parameter(torch.zeros(2))
    }
    return p


# ------------------------------ main ------------------------------

if __name__ == "__main__":
    N, CIN, COUT, H, W = 2, 4, 8, 16, 16
    key = jax.random.PRNGKey(0)
    kx, kp = jax.random.split(key)
    x = jax.random.normal(kx, (N, CIN, H, W), jnp.float32)
    params = init_params(kp, CIN, COUT)

    out = jax.block_until_ready(downsample_layer_forward(x, params, use_pallas=True))
    ref = jax.block_until_ready(downsample_layer_forward(x, params, use_pallas=False))

    assert out.shape == (N, COUT, H // 2, W // 2), out.shape
    assert bool(jnp.all(jnp.isfinite(out)))
    assert bool(jnp.allclose(out, ref, rtol=2e-3, atol=2e-3)), \
        float(jnp.max(jnp.abs(out - ref)))
    print("KERNEL_OK")
</pallas_src>

<mosaic_0001>
module attributes {stable_mosaic.version = 11 : i64} {
  func.func @_mm_affine_kernel(%arg0: i32, %arg1: memref<512x4xf32, #tpu.memory_space<vmem>>, %arg2: memref<4x4xf32, #tpu.memory_space<vmem>>, %arg3: memref<1x4xf32, #tpu.memory_space<vmem>>, %arg4: memref<1x4xf32, #tpu.memory_space<vmem>>, %arg5: memref<512x4xf32, #tpu.memory_space<vmem>>) attributes {dimension_semantics = [#tpu.dimension_semantics<parallel>], iteration_bounds = array<i64: 1>, scalar_prefetch = 0 : i64, scratch_operands = 0 : i64, tpu.core_type = #tpu.core_type<tc>, window_params = [{transform_indices = @transform_0, window_bounds = array<i64: 512, 4>}, {pipeline_mode = #tpu.pipeline_mode<synchronous>, transform_indices = @transform_1, window_bounds = array<i64: 4, 4>}, {pipeline_mode = #tpu.pipeline_mode<synchronous>, transform_indices = @transform_2, window_bounds = array<i64: 1, 4>}, {pipeline_mode = #tpu.pipeline_mode<synchronous>, transform_indices = @transform_3, window_bounds = array<i64: 1, 4>}, {transform_indices = @transform_4, window_bounds = array<i64: 512, 4>}]} {
    %c0 = arith.constant 0 : index
    %c0_0 = arith.constant 0 : index
    %0 = vector.load %arg1[%c0, %c0_0] : memref<512x4xf32, #tpu.memory_space<vmem>>, vector<512x4xf32>
    %c0_1 = arith.constant 0 : index
    %c0_2 = arith.constant 0 : index
    %1 = vector.load %arg2[%c0_1, %c0_2] : memref<4x4xf32, #tpu.memory_space<vmem>>, vector<4x4xf32>
    %cst = arith.constant dense<0.000000e+00> : vector<512x4xf32>
    %2 = tpu.matmul %0, %1, %cst {dimension_numbers = #tpu.dot_dimension_numbers<[1], [0], [0], [1], [0, 0, 1, 1], [], []>} : vector<512x4xf32>, vector<4x4xf32>, vector<512x4xf32> -> vector<512x4xf32>
    %c0_3 = arith.constant 0 : index
    %c0_4 = arith.constant 0 : index
    %3 = vector.load %arg3[%c0_3, %c0_4] : memref<1x4xf32, #tpu.memory_space<vmem>>, vector<1x4xf32>
    %4 = vector.broadcast %3 : vector<1x4xf32> to vector<512x4xf32>
    %5 = arith.mulf %2, %4 : vector<512x4xf32>
    %c0_5 = arith.constant 0 : index
    %c0_6 = arith.constant 0 : index
    %6 = vector.load %arg4[%c0_5, %c0_6] : memref<1x4xf32, #tpu.memory_space<vmem>>, vector<1x4xf32>
    %7 = vector.broadcast %6 : vector<1x4xf32> to vector<512x4xf32>
    %8 = arith.addf %5, %7 : vector<512x4xf32>
    %cst_7 = arith.constant 0.000000e+00 : f32
    %9 = vector.broadcast %cst_7 : f32 to vector<512x4xf32>
    %10 = arith.maximumf %8, %9 : vector<512x4xf32>
    %c0_8 = arith.constant 0 : index
    %c0_9 = arith.constant 0 : index
    %11 = vector.load %arg5[%c0_8, %c0_9] : memref<512x4xf32, #tpu.memory_space<vmem>>, vector<512x4xf32>
    tpu.vector_store %arg5[%c0_8, %c0_9], %10 {strides = array<i32>} : memref<512x4xf32, #tpu.memory_space<vmem>>, vector<512x4xf32>,
    return
  }
  func.func @transform_0(%arg0: i32) -> (i32, i32) {
    %c0_i32 = arith.constant 0 : i32
    %c0_i32_0 = arith.constant 0 : i32
    return %arg0, %c0_i32 : i32, i32
  }
  func.func @transform_1(%arg0: i32) -> (i32, i32) {
    %c0_i32 = arith.constant 0 : i32
    %c0_i32_0 = arith.constant 0 : i32
    %c0_i32_1 = arith.constant 0 : i32
    return %c0_i32, %c0_i32_0 : i32, i32
  }
  func.func @transform_2(%arg0: i32) -> (i32, i32) {
    %c0_i32 = arith.constant 0 : i32
    %c0_i32_0 = arith.constant 0 : i32
    %c0_i32_1 = arith.constant 0 : i32
    return %c0_i32, %c0_i32_0 : i32, i32
  }
  func.func @transform_3(%arg0: i32) -> (i32, i32) {
    %c0_i32 = arith.constant 0 : i32
    %c0_i32_0 = arith.constant 0 : i32
    %c0_i32_1 = arith.constant 0 : i32
    return %c0_i32, %c0_i32_0 : i32, i32
  }
  func.func @transform_4(%arg0: i32) -> (i32, i32) {
    %c0_i32 = arith.constant 0 : i32
    %c0_i32_0 = arith.constant 0 : i32
    return %arg0, %c0_i32 : i32, i32
  }
}

</mosaic_0001>

<bundles_post_ra>
// kernel: tpu_custom_call.1
= control target key start
LH: loop header
LB: loop body
LE: loop exit
PB: predicated region body
PF: predicated region fallthrough
CT: control target
= control target key end

     0   :  { %vm275_vm0 = vcmask 1043456   ;;  %vm82_vm1 = vcmask 31744   ;;  %s1848_s1 = inlined_call_operand.vmem [shape: f32[4,4], index: 1, kind: input, shape index: {}]   ;;  %s1849_s0 = inlined_call_operand.vmem [shape: f32[512,4], index: 0, kind: input, shape index: {}]   ;;  %s1850_s2 = inlined_call_operand.vmem [shape: f32[1,4], index: 2, kind: input, shape index: {}]   ;;  %s1851_s3 = inlined_call_operand.vmem [shape: f32[1,4], index: 3, kind: input, shape index: {}]   ;;  %s1852_s4 = inlined_call_operand.vmem [shape: f32[512,4], index: 4, kind: output, shape index: {}]  }
   0x1   :  { %v81_v0 = vld [vmem:[%s1848_s1] sm:$0xf]  ;;  %v18_v3 = vld [vmem:[%s1849_s0 + $0x8] sm:$0xff]  ;;  %v19_v5 = vld [vmem:[%s1849_s0 + $0x10] sm:$0xff] }
   0x2   :  { %v17_v1 = vld [vmem:[%s1849_s0] sm:$0xff]  ;;  %1070 = vmatprep.subr.msk.mxu0 %vm275_vm0, %v81_v0  ;;  %1168 = vmatprep.subr.msk.mxu1 %vm275_vm0, %v81_v0  ;;  %v50_v4 = vld [vmem:[%s1849_s0 + $0x108] sm:$0xff]  ;;  %v51_v6 = vld [vmem:[%s1849_s0 + $0x110] sm:$0xff] }
   0x3   :  { %v49_v2 = vld [vmem:[%s1849_s0 + $0x100] sm:$0xff]  ;;  %1071 = vmatpush3.msk.msra.mxu0 %vm275_vm0, %v81_v0  ;;  %1169 = vmatpush3.msk.msra.mxu1 %vm275_vm0, %v81_v0  ;;  %v20_v7 = vld [vmem:[%s1849_s0 + $0x18] sm:$0xff]  ;;  %v22_v11 = vld [vmem:[%s1849_s0 + $0x28] sm:$0xff] }
   0x4   :  { %1072 = vmatprep.mubr.msk.f32.mxu0 %vm82_vm1, %v17_v1  ;;  %1120 = vmatprep.mubr.msk.f32.mxu1 %vm82_vm1, %v49_v2  ;;  %v52_v8 = vld [vmem:[%s1849_s0 + $0x118] sm:$0xff]  ;;  %v21_v9 = vld [vmem:[%s1849_s0 + $0x20] sm:$0xff]  ;;  %v54_v12 = vld [vmem:[%s1849_s0 + $0x128] sm:$0xff] }
   0x5   :  { %1073 = vmatmul.mubr.msk.f32.vlgmr.msra.gmra.mrb[0].mxu0 %vm82_vm1, %v18_v3  ;;  %1121 = vmatmul.mubr.msk.f32.vlgmr.msra.gmra.mrb[0].mxu1 %vm82_vm1, %v50_v4  ;;  %v53_v10 = vld [vmem:[%s1849_s0 + $0x120] sm:$0xff]  ;;  %v23_v13 = vld [vmem:[%s1849_s0 + $0x30] sm:$0xff]  ;;  %v24_v15 = vld [vmem:[%s1849_s0 + $0x38] sm:$0xff] }
   0x6   :  { %1075 = vmatprep.mubr.msk.f32.mxu0 %vm82_vm1, %v19_v5  ;;  %1123 = vmatprep.mubr.msk.f32.mxu1 %vm82_vm1, %v51_v6  ;;  %v55_v14 = vld [vmem:[%s1849_s0 + $0x130] sm:$0xff]  ;;  %v56_v16 = vld [vmem:[%s1849_s0 + $0x138] sm:$0xff]  ;;  %v25_v17 = vld [vmem:[%s1849_s0 + $0x40] sm:$0xff] }
   0x7   :  { %v57_v18 = vld [vmem:[%s1849_s0 + $0x140] sm:$0xff]  ;;  %v26_v19 = vld [vmem:[%s1849_s0 + $0x48] sm:$0xff]  ;;  %v27_v21 = vld [vmem:[%s1849_s0 + $0x50] sm:$0xff] }
   0x8   :  { %v58_v20 = vld [vmem:[%s1849_s0 + $0x148] sm:$0xff]  ;;  %v59_v22 = vld [vmem:[%s1849_s0 + $0x150] sm:$0xff]  ;;  %v28_v23 = vld [vmem:[%s1849_s0 + $0x58] sm:$0xff] }
   0x9   :  { %1076 = vmatmul.mubr.msk.f32.gmra.mrb[2].mxu0 %vm82_vm1, %v20_v7  ;;  %1124 = vmatmul.mubr.msk.f32.gmra.mrb[2].mxu1 %vm82_vm1, %v52_v8  ;;  %v60_v24 = vld [vmem:[%s1849_s0 + $0x158] sm:$0xff]  ;;  %v29_v25 = vld [vmem:[%s1849_s0 + $0x60] sm:$0xff]  ;;  %v30_v27 = vld [vmem:[%s1849_s0 + $0x68] sm:$0xff] }
   0xa   :  { %1078 = vmatprep.mubr.msk.f32.mxu0 %vm82_vm1, %v21_v9  ;;  %1126 = vmatprep.mubr.msk.f32.mxu1 %vm82_vm1, %v53_v10  ;;  %v61_v26 = vld [vmem:[%s1849_s0 + $0x160] sm:$0xff]  ;;  %v62_v28 = vld [vmem:[%s1849_s0 + $0x168] sm:$0xff]  ;;  %v31_v29 = vld [vmem:[%s1849_s0 + $0x70] sm:$0xff] }
   0xb   :  { %v63_v30 = vld [vmem:[%s1849_s0 + $0x170] sm:$0xff]  ;;  %v32_v31 = vld [vmem:[%s1849_s0 + $0x78] sm:$0xff]  ;;  %v33_v33 = vld [vmem:[%s1849_s0 + $0x80] sm:$0xff] }
   0xc   :  { %v64_v32 = vld [vmem:[%s1849_s0 + $0x178] sm:$0xff]  ;;  %v65_v34 = vld [vmem:[%s1849_s0 + $0x180] sm:$0xff]  ;;  %v34_v35 = vld [vmem:[%s1849_s0 + $0x88] sm:$0xff] }
   0xd   :  { %1079 = vmatmul.mubr.msk.f32.gmra.mrb[4].mxu0 %vm82_vm1, %v22_v11  ;;  %1127 = vmatmul.mubr.msk.f32.gmra.mrb[4].mxu1 %vm82_vm1, %v54_v12  ;;  %v66_v36 = vld [vmem:[%s1849_s0 + $0x188] sm:$0xff]  ;;  %v35_v37 = vld [vmem:[%s1849_s0 + $0x90] sm:$0xff]  ;;  %v36_v39 = vld [vmem:[%s1849_s0 + $0x98] sm:$0xff] }
   0xe   :  { %1081 = vmatprep.mubr.msk.f32.mxu0 %vm82_vm1, %v23_v13  ;;  %1129 = vmatprep.mubr.msk.f32.mxu1 %vm82_vm1, %v55_v14  ;;  %v67_v38 = vld [vmem:[%s1849_s0 + $0x190] sm:$0xff]  ;;  %v68_v40 = vld [vmem:[%s1849_s0 + $0x198] sm:$0xff]  ;;  %v37_v41 = vld [vmem:[%s1849_s0 + $0xa0] sm:$0xff] }
   0xf   :  { %v69_v42 = vld [vmem:[%s1849_s0 + $0x1a0] sm:$0xff]  ;;  %v38_v43 = vld [vmem:[%s1849_s0 + $0xa8] sm:$0xff]  ;;  %v39_v45 = vld [vmem:[%s1849_s0 + $0xb0] sm:$0xff] }
  0x10   :  { %v70_v44 = vld [vmem:[%s1849_s0 + $0x1a8] sm:$0xff]  ;;  %v71_v46 = vld [vmem:[%s1849_s0 + $0x1b0] sm:$0xff]  ;;  %v40_v47 = vld [vmem:[%s1849_s0 + $0xb8] sm:$0xff] }
  0x11   :  { %1082 = vmatmul.mubr.msk.f32.gmra.mrb[6].mxu0 %vm82_vm1, %v24_v15  ;;  %1130 = vmatmul.mubr.msk.f32.gmra.mrb[6].mxu1 %vm82_vm1, %v56_v16  ;;  %v72_v48 = vld [vmem:[%s1849_s0 + $0x1b8] sm:$0xff]  ;;  %v41_v49 = vld [vmem:[%s1849_s0 + $0xc0] sm:$0xff]  ;;  %v42_v51 = vld [vmem:[%s1849_s0 + $0xc8] sm:$0xff] }
  0x12   :  { %1084 = vmatprep.mubr.msk.f32.mxu0 %vm82_vm1, %v25_v17  ;;  %1132 = vmatprep.mubr.msk.f32.mxu1 %vm82_vm1, %v57_v18  ;;  %v73_v50 = vld [vmem:[%s1849_s0 + $0x1c0] sm:$0xff]  ;;  %v74_v52 = vld [vmem:[%s1849_s0 + $0x1c8] sm:$0xff]  ;;  %v43_v53 = vld [vmem:[%s1849_s0 + $0xd0] sm:$0xff] }
  0x13   :  { %v75_v54 = vld [vmem:[%s1849_s0 + $0x1d0] sm:$0xff]  ;;  %v44_v55 = vld [vmem:[%s1849_s0 + $0xd8] sm:$0xff]  ;;  %v45_v57 = vld [vmem:[%s1849_s0 + $0xe0] sm:$0xff] }
  0x14   :  { %v76_v56 = vld [vmem:[%s1849_s0 + $0x1d8] sm:$0xff]  ;;  %v77_v58 = vld [vmem:[%s1849_s0 + $0x1e0] sm:$0xff]  ;;  %v46_v59 = vld [vmem:[%s1849_s0 + $0xe8] sm:$0xff] }
  0x15   :  { %1085 = vmatmul.mubr.msk.f32.gmra.mrb[8].mxu0 %vm82_vm1, %v26_v19  ;;  %1133 = vmatmul.mubr.msk.f32.gmra.mrb[8].mxu1 %vm82_vm1, %v58_v20  ;;  %v78_v60 = vld [vmem:[%s1849_s0 + $0x1e8] sm:$0xff]  ;;  %v47_v61 = vld [vmem:[%s1849_s0 + $0xf0] sm:$0xff]  ;;  %v48_v63 = vld [vmem:[%s1849_s0 + $0xf8] sm:$0xff] }
  0x16   :  { %1087 = vmatprep.mubr.msk.f32.mxu0 %vm82_vm1, %v27_v21  ;;  %1135 = vmatprep.mubr.msk.f32.mxu1 %vm82_vm1, %v59_v22  ;;  %v79_v62 = vld [vmem:[%s1849_s0 + $0x1f0] sm:$0xff]  ;;  %v80_v0 = vld [vmem:[%s1849_s0 + $0x1f8] sm:$0xff]  ;;  %v1457_v1 = vld [vmem:[%s1850_s2] ss:$0 sm:$0xff] }
  0x17   :  { %v1462_v3 = vld [vmem:[%s1851_s3] ss:$0 sm:$0xff] }
  0x19   :  { %1088 = vmatmul.mubr.msk.f32.gmra.mrb[10].mxu0 %vm82_vm1, %v28_v23  ;;  %1136 = vmatmul.mubr.msk.f32.gmra.mrb[10].mxu1 %vm82_vm1, %v60_v24 }
  0x1a   :  { %1090 = vmatprep.mubr.msk.f32.mxu0 %vm82_vm1, %v29_v25  ;;  %1138 = vmatprep.mubr.msk.f32.mxu1 %vm82_vm1, %v61_v26 }
  0x1d   :  { %1091 = vmatmul.mubr.msk.f32.gmra.mrb[12].mxu0 %vm82_vm1, %v30_v27  ;;  %1139 = vmatmul.mubr.msk.f32.gmra.mrb[12].mxu1 %vm82_vm1, %v62_v28 }
  0x1e   :  { %1093 = vmatprep.mubr.msk.f32.mxu0 %vm82_vm1, %v31_v29  ;;  %1141 = vmatprep.mubr.msk.f32.mxu1 %vm82_vm1, %v63_v30 }
  0x21   :  { %1094 = vmatmul.mubr.msk.f32.gmra.mrb[14].mxu0 %vm82_vm1, %v32_v31  ;;  %1142 = vmatmul.mubr.msk.f32.gmra.mrb[14].mxu1 %vm82_vm1, %v64_v32 }
  0x22   :  { %1096 = vmatprep.mubr.msk.f32.mxu0 %vm82_vm1, %v33_v33  ;;  %1144 = vmatprep.mubr.msk.f32.mxu1 %vm82_vm1, %v65_v34 }
  0x25   :  { %1097 = vmatmul.mubr.msk.f32.gmra.mrb[16].mxu0 %vm82_vm1, %v34_v35  ;;  %1145 = vmatmul.mubr.msk.f32.gmra.mrb[16].mxu1 %vm82_vm1, %v66_v36 }
  0x26   :  { %1099 = vmatprep.mubr.msk.f32.mxu0 %vm82_vm1, %v35_v37  ;;  %1147 = vmatprep.mubr.msk.f32.mxu1 %vm82_vm1, %v67_v38 }
  0x29   :  { %1100 = vmatmul.mubr.msk.f32.gmra.mrb[18].mxu0 %vm82_vm1, %v36_v39  ;;  %1148 = vmatmul.mubr.msk.f32.gmra.mrb[18].mxu1 %vm82_vm1, %v68_v40 }
  0x2a   :  { %1102 = vmatprep.mubr.msk.f32.mxu0 %vm82_vm1, %v37_v41  ;;  %1150 = vmatprep.mubr.msk.f32.mxu1 %vm82_vm1, %v69_v42 }
  0x2d   :  { %1103 = vmatmul.mubr.msk.f32.gmra.mrb[20].mxu0 %vm82_vm1, %v38_v43  ;;  %1151 = vmatmul.mubr.msk.f32.gmra.mrb[20].mxu1 %vm82_vm1, %v70_v44 }
  0x2e   :  { %1105 = vmatprep.mubr.msk.f32.mxu0 %vm82_vm1, %v39_v45  ;;  %1153 = vmatprep.mubr.msk.f32.mxu1 %vm82_vm1, %v71_v46 }
  0x31   :  { %1106 = vmatmul.mubr.msk.f32.gmra.mrb[22].mxu0 %vm82_vm1, %v40_v47  ;;  %1154 = vmatmul.mubr.msk.f32.gmra.mrb[22].mxu1 %vm82_vm1, %v72_v48 }
  0x32   :  { %1108 = vmatprep.mubr.msk.f32.mxu0 %vm82_vm1, %v41_v49  ;;  %1156 = vmatprep.mubr.msk.f32.mxu1 %vm82_vm1, %v73_v50 }
  0x35   :  { %1109 = vmatmul.mubr.msk.f32.gmra.mrb[24].mxu0 %vm82_vm1, %v42_v51  ;;  %1157 = vmatmul.mubr.msk.f32.gmra.mrb[24].mxu1 %vm82_vm1, %v74_v52 }
  0x36   :  { %1111 = vmatprep.mubr.msk.f32.mxu0 %vm82_vm1, %v43_v53  ;;  %1159 = vmatprep.mubr.msk.f32.mxu1 %vm82_vm1, %v75_v54 }
  0x39   :  { %1112 = vmatmul.mubr.msk.f32.gmra.mrb[26].mxu0 %vm82_vm1, %v44_v55  ;;  %1160 = vmatmul.mubr.msk.f32.gmra.mrb[26].mxu1 %vm82_vm1, %v76_v56 }
  0x3a   :  { %1114 = vmatprep.mubr.msk.f32.mxu0 %vm82_vm1, %v45_v57  ;;  %1162 = vmatprep.mubr.msk.f32.mxu1 %vm82_vm1, %v77_v58 }
  0x3d   :  { %1115 = vmatmul.mubr.msk.f32.gmra.mrb[28].mxu0 %vm82_vm1, %v46_v59  ;;  %1163 = vmatmul.mubr.msk.f32.gmra.mrb[28].mxu1 %vm82_vm1, %v78_v60 }
  0x3e   :  { %1117 = vmatprep.mubr.msk.f32.mxu0 %vm82_vm1, %v47_v61  ;;  %1165 = vmatprep.mubr.msk.f32.mxu1 %vm82_vm1, %v79_v62 }
  0x41   :  { %1118 = vmatmul.mubr.msk.f32.gmra.mrb[30].mxu0 %vm82_vm1, %v48_v63  ;;  %1166 = vmatmul.mubr.msk.f32.gmra.mrb[30].mxu1 %vm82_vm1, %v80_v0 }
  0xd8   :  { %v1074_v2 = vpop.f32.mrb[0].mxu0  ;;  %v1122_v4 = vpop.f32.mrb[0].mxu1 }
  0xd9   :  { %v672_v5 = vmul.f32 %v1074_v2, %v1457_v1  ;;  %v704_v6 = vmul.f32 %v1122_v4, %v1457_v1  ;;  %v345_v7 = vpop.f32.mrb[1].mxu0  ;;  %v505_v8 = vpop.f32.mrb[1].mxu1 }
  0xda   :  { %v671_v9 = vmul.f32 %v1457_v1, %v345_v7  ;;  %v703_v10 = vmul.f32 %v1457_v1, %v505_v8 }
  0xdb   :  { %v743_v11 = vadd.f32 %v1462_v3, %v672_v5  ;;  %v775_v12 = vadd.f32 %v1462_v3, %v704_v6 }
  0xdc   :  { %v742_v13 = vadd.f32 %v1462_v3, %v671_v9  ;;  %v774_v14 = vadd.f32 %v1462_v3, %v703_v10  ;;  %v1077_v15 = vpop.f32.mrb[2].mxu0  ;;  %v1125_v16 = vpop.f32.mrb[2].mxu1 }
  0xdd   :  { %v807_v17 = vmax.f32 %v743_v11, 0.0  ;;  %v839_v18 = vmax.f32 %v775_v12, 0.0  ;;  %v674_v19 = vmul.f32 %v1077_v15, %v1457_v1  ;;  %v706_v20 = vmul.f32 %v1125_v16, %v1457_v1  ;;  %v355_v21 = vpop.f32.mrb[3].mxu0  ;;  %v515_v22 = vpop.f32.mrb[3].mxu1 }
  0xde   :  { %v806_v23 = vmax.f32 %v742_v13, 0.0  ;;  %v838_v24 = vmax.f32 %v774_v14, 0.0  ;;  %v673_v25 = vmul.f32 %v1457_v1, %v355_v21  ;;  %v705_v26 = vmul.f32 %v1457_v1, %v515_v22 }
  0xdf   :  { %871 = vst.msk [vmem:[%s1852_s4 + $0x8] sm:$0xff] %vm82_vm1, %v807_v17  ;;  %903 = vst.msk [vmem:[%s1852_s4 + $0x108] sm:$0xff] %vm82_vm1, %v839_v18  ;;  %v745_v27 = vadd.f32 %v1462_v3, %v674_v19  ;;  %v777_v28 = vadd.f32 %v1462_v3, %v706_v20 }
  0xe0   :  { %870 = vst.msk [vmem:[%s1852_s4] sm:$0xff] %vm82_vm1, %v806_v23  ;;  %902 = vst.msk [vmem:[%s1852_s4 + $0x100] sm:$0xff] %vm82_vm1, %v838_v24  ;;  %v744_v29 = vadd.f32 %v1462_v3, %v673_v25  ;;  %v776_v30 = vadd.f32 %v1462_v3, %v705_v26  ;;  %v1080_v31 = vpop.f32.mrb[4].mxu0  ;;  %v1128_v32 = vpop.f32.mrb[4].mxu1 }
  0xe1   :  { %v809_v33 = vmax.f32 %v745_v27, 0.0  ;;  %v841_v34 = vmax.f32 %v777_v28, 0.0  ;;  %v676_v35 = vmul.f32 %v1080_v31, %v1457_v1  ;;  %v708_v36 = vmul.f32 %v1128_v32, %v1457_v1  ;;  %v365_v37 = vpop.f32.mrb[5].mxu0  ;;  %v525_v38 = vpop.f32.mrb[5].mxu1 }
  0xe2   :  { %v808_v39 = vmax.f32 %v744_v29, 0.0  ;;  %v840_v40 = vmax.f32 %v776_v30, 0.0  ;;  %v675_v41 = vmul.f32 %v1457_v1, %v365_v37  ;;  %v707_v42 = vmul.f32 %v1457_v1, %v525_v38 }
  0xe3   :  { %873 = vst.msk [vmem:[%s1852_s4 + $0x18] sm:$0xff] %vm82_vm1, %v809_v33  ;;  %905 = vst.msk [vmem:[%s1852_s4 + $0x118] sm:$0xff] %vm82_vm1, %v841_v34  ;;  %v747_v43 = vadd.f32 %v1462_v3, %v676_v35  ;;  %v779_v44 = vadd.f32 %v1462_v3, %v708_v36 }
  0xe4   :  { %872 = vst.msk [vmem:[%s1852_s4 + $0x10] sm:$0xff] %vm82_vm1, %v808_v39  ;;  %904 = vst.msk [vmem:[%s1852_s4 + $0x110] sm:$0xff] %vm82_vm1, %v840_v40  ;;  %v746_v45 = vadd.f32 %v1462_v3, %v675_v41  ;;  %v778_v46 = vadd.f32 %v1462_v3, %v707_v42  ;;  %v1083_v47 = vpop.f32.mrb[6].mxu0  ;;  %v1131_v48 = vpop.f32.mrb[6].mxu1 }
  0xe5   :  { %v811_v49 = vmax.f32 %v747_v43, 0.0  ;;  %v843_v50 = vmax.f32 %v779_v44, 0.0  ;;  %v678_v51 = vmul.f32 %v1083_v47, %v1457_v1  ;;  %v710_v52 = vmul.f32 %v1131_v48, %v1457_v1  ;;  %v375_v53 = vpop.f32.mrb[7].mxu0  ;;  %v535_v54 = vpop.f32.mrb[7].mxu1 }
  0xe6   :  { %v810_v55 = vmax.f32 %v746_v45, 0.0  ;;  %v842_v56 = vmax.f32 %v778_v46, 0.0  ;;  %v677_v57 = vmul.f32 %v1457_v1, %v375_v53  ;;  %v709_v58 = vmul.f32 %v1457_v1, %v535_v54 }
  0xe7   :  { %875 = vst.msk [vmem:[%s1852_s4 + $0x28] sm:$0xff] %vm82_vm1, %v811_v49  ;;  %907 = vst.msk [vmem:[%s1852_s4 + $0x128] sm:$0xff] %vm82_vm1, %v843_v50  ;;  %v749_v59 = vadd.f32 %v1462_v3, %v678_v51  ;;  %v781_v60 = vadd.f32 %v1462_v3, %v710_v52 }
  0xe8   :  { %874 = vst.msk [vmem:[%s1852_s4 + $0x20] sm:$0xff] %vm82_vm1, %v810_v55  ;;  %906 = vst.msk [vmem:[%s1852_s4 + $0x120] sm:$0xff] %vm82_vm1, %v842_v56  ;;  %v748_v61 = vadd.f32 %v1462_v3, %v677_v57  ;;  %v780_v62 = vadd.f32 %v1462_v3, %v709_v58  ;;  %v1086_v63 = vpop.f32.mrb[8].mxu0  ;;  %v1134_v0 = vpop.f32.mrb[8].mxu1 }
  0xe9   :  { %v813_v2 = vmax.f32 %v749_v59, 0.0  ;;  %v845_v4 = vmax.f32 %v781_v60, 0.0  ;;  %v680_v5 = vmul.f32 %v1086_v63, %v1457_v1  ;;  %v712_v6 = vmul.f32 %v1134_v0, %v1457_v1  ;;  %v385_v7 = vpop.f32.mrb[9].mxu0  ;;  %v545_v8 = vpop.f32.mrb[9].mxu1 }
  0xea   :  { %v812_v9 = vmax.f32 %v748_v61, 0.0  ;;  %v844_v10 = vmax.f32 %v780_v62, 0.0  ;;  %v679_v11 = vmul.f32 %v1457_v1, %v385_v7  ;;  %v711_v12 = vmul.f32 %v1457_v1, %v545_v8 }
  0xeb   :  { %877 = vst.msk [vmem:[%s1852_s4 + $0x38] sm:$0xff] %vm82_vm1, %v813_v2  ;;  %909 = vst.msk [vmem:[%s1852_s4 + $0x138] sm:$0xff] %vm82_vm1, %v845_v4  ;;  %v751_v13 = vadd.f32 %v1462_v3, %v680_v5  ;;  %v783_v14 = vadd.f32 %v1462_v3, %v712_v6 }
  0xec   :  { %876 = vst.msk [vmem:[%s1852_s4 + $0x30] sm:$0xff] %vm82_vm1, %v812_v9  ;;  %908 = vst.msk [vmem:[%s1852_s4 + $0x130] sm:$0xff] %vm82_vm1, %v844_v10  ;;  %v750_v15 = vadd.f32 %v1462_v3, %v679_v11  ;;  %v782_v16 = vadd.f32 %v1462_v3, %v711_v12  ;;  %v1089_v17 = vpop.f32.mrb[10].mxu0  ;;  %v1137_v18 = vpop.f32.mrb[10].mxu1 }
  0xed   :  { %v815_v19 = vmax.f32 %v751_v13, 0.0  ;;  %v847_v20 = vmax.f32 %v783_v14, 0.0  ;;  %v682_v21 = vmul.f32 %v1089_v17, %v1457_v1  ;;  %v714_v22 = vmul.f32 %v1137_v18, %v1457_v1  ;;  %v395_v23 = vpop.f32.mrb[11].mxu0  ;;  %v555_v24 = vpop.f32.mrb[11].mxu1 }
  0xee   :  { %v814_v25 = vmax.f32 %v750_v15, 0.0  ;;  %v846_v26 = vmax.f32 %v782_v16, 0.0  ;;  %v681_v27 = vmul.f32 %v1457_v1, %v395_v23  ;;  %v713_v28 = vmul.f32 %v1457_v1, %v555_v24 }
  0xef   :  { %879 = vst.msk [vmem:[%s1852_s4 + $0x48] sm:$0xff] %vm82_vm1, %v815_v19  ;;  %911 = vst.msk [vmem:[%s1852_s4 + $0x148] sm:$0xff] %vm82_vm1, %v847_v20  ;;  %v753_v29 = vadd.f32 %v1462_v3, %v682_v21  ;;  %v785_v30 = vadd.f32 %v1462_v3, %v714_v22 }
  0xf0   :  { %878 = vst.msk [vmem:[%s1852_s4 + $0x40] sm:$0xff] %vm82_vm1, %v814_v25  ;;  %910 = vst.msk [vmem:[%s1852_s4 + $0x140] sm:$0xff] %vm82_vm1, %v846_v26  ;;  %v752_v31 = vadd.f32 %v1462_v3, %v681_v27  ;;  %v784_v32 = vadd.f32 %v1462_v3, %v713_v28  ;;  %v1092_v33 = vpop.f32.mrb[12].mxu0  ;;  %v1140_v34 = vpop.f32.mrb[12].mxu1 }
  0xf1   :  { %v817_v35 = vmax.f32 %v753_v29, 0.0  ;;  %v849_v36 = vmax.f32 %v785_v30, 0.0  ;;  %v684_v37 = vmul.f32 %v1092_v33, %v1457_v1  ;;  %v716_v38 = vmul.f32 %v1140_v34, %v1457_v1  ;;  %v405_v39 = vpop.f32.mrb[13].mxu0  ;;  %v565_v40 = vpop.f32.mrb[13].mxu1 }
  0xf2   :  { %v816_v41 = vmax.f32 %v752_v31, 0.0  ;;  %v848_v42 = vmax.f32 %v784_v32, 0.0  ;;  %v683_v43 = vmul.f32 %v1457_v1, %v405_v39  ;;  %v715_v44 = vmul.f32 %v1457_v1, %v565_v40 }
  0xf3   :  { %881 = vst.msk [vmem:[%s1852_s4 + $0x58] sm:$0xff] %vm82_vm1, %v817_v35  ;;  %913 = vst.msk [vmem:[%s1852_s4 + $0x158] sm:$0xff] %vm82_vm1, %v849_v36  ;;  %v755_v45 = vadd.f32 %v1462_v3, %v684_v37  ;;  %v787_v46 = vadd.f32 %v1462_v3, %v716_v38 }
  0xf4   :  { %880 = vst.msk [vmem:[%s1852_s4 + $0x50] sm:$0xff] %vm82_vm1, %v816_v41  ;;  %912 = vst.msk [vmem:[%s1852_s4 + $0x150] sm:$0xff] %vm82_vm1, %v848_v42  ;;  %v754_v47 = vadd.f32 %v1462_v3, %v683_v43  ;;  %v786_v48 = vadd.f32 %v1462_v3, %v715_v44  ;;  %v1095_v49 = vpop.f32.mrb[14].mxu0  ;;  %v1143_v50 = vpop.f32.mrb[14].mxu1 }
  0xf5   :  { %v819_v51 = vmax.f32 %v755_v45, 0.0  ;;  %v851_v52 = vmax.f32 %v787_v46, 0.0  ;;  %v686_v53 = vmul.f32 %v1095_v49, %v1457_v1  ;;  %v718_v54 = vmul.f32 %v1143_v50, %v1457_v1  ;;  %v415_v55 = vpop.f32.mrb[15].mxu0  ;;  %v575_v56 = vpop.f32.mrb[15].mxu1 }
  0xf6   :  { %v818_v57 = vmax.f32 %v754_v47, 0.0  ;;  %v850_v58 = vmax.f32 %v786_v48, 0.0  ;;  %v685_v59 = vmul.f32 %v1457_v1, %v415_v55  ;;  %v717_v60 = vmul.f32 %v1457_v1, %v575_v56 }
  0xf7   :  { %883 = vst.msk [vmem:[%s1852_s4 + $0x68] sm:$0xff] %vm82_vm1, %v819_v51  ;;  %915 = vst.msk [vmem:[%s1852_s4 + $0x168] sm:$0xff] %vm82_vm1, %v851_v52  ;;  %v757_v61 = vadd.f32 %v1462_v3, %v686_v53  ;;  %v789_v62 = vadd.f32 %v1462_v3, %v718_v54 }
  0xf8   :  { %882 = vst.msk [vmem:[%s1852_s4 + $0x60] sm:$0xff] %vm82_vm1, %v818_v57  ;;  %914 = vst.msk [vmem:[%s1852_s4 + $0x160] sm:$0xff] %vm82_vm1, %v850_v58  ;;  %v756_v63 = vadd.f32 %v1462_v3, %v685_v59  ;;  %v788_v0 = vadd.f32 %v1462_v3, %v717_v60  ;;  %v1098_v2 = vpop.f32.mrb[16].mxu0  ;;  %v1146_v4 = vpop.f32.mrb[16].mxu1 }
  0xf9   :  { %v821_v5 = vmax.f32 %v757_v61, 0.0  ;;  %v853_v6 = vmax.f32 %v789_v62, 0.0  ;;  %v688_v7 = vmul.f32 %v1098_v2, %v1457_v1  ;;  %v720_v8 = vmul.f32 %v1146_v4, %v1457_v1  ;;  %v425_v9 = vpop.f32.mrb[17].mxu0  ;;  %v585_v10 = vpop.f32.mrb[17].mxu1 }
  0xfa   :  { %v820_v11 = vmax.f32 %v756_v63, 0.0  ;;  %v852_v12 = vmax.f32 %v788_v0, 0.0  ;;  %v687_v13 = vmul.f32 %v1457_v1, %v425_v9  ;;  %v719_v14 = vmul.f32 %v1457_v1, %v585_v10 }
  0xfb   :  { %885 = vst.msk [vmem:[%s1852_s4 + $0x78] sm:$0xff] %vm82_vm1, %v821_v5  ;;  %917 = vst.msk [vmem:[%s1852_s4 + $0x178] sm:$0xff] %vm82_vm1, %v853_v6  ;;  %v759_v15 = vadd.f32 %v1462_v3, %v688_v7  ;;  %v791_v16 = vadd.f32 %v1462_v3, %v720_v8 }
  0xfc   :  { %884 = vst.msk [vmem:[%s1852_s4 + $0x70] sm:$0xff] %vm82_vm1, %v820_v11  ;;  %916 = vst.msk [vmem:[%s1852_s4 + $0x170] sm:$0xff] %vm82_vm1, %v852_v12  ;;  %v758_v17 = vadd.f32 %v1462_v3, %v687_v13  ;;  %v790_v18 = vadd.f32 %v1462_v3, %v719_v14  ;;  %v1101_v19 = vpop.f32.mrb[18].mxu0  ;;  %v1149_v20 = vpop.f32.mrb[18].mxu1 }
  0xfd   :  { %v823_v21 = vmax.f32 %v759_v15, 0.0  ;;  %v855_v22 = vmax.f32 %v791_v16, 0.0  ;;  %v690_v23 = vmul.f32 %v1101_v19, %v1457_v1  ;;  %v722_v24 = vmul.f32 %v1149_v20, %v1457_v1  ;;  %v435_v25 = vpop.f32.mrb[19].mxu0  ;;  %v595_v26 = vpop.f32.mrb[19].mxu1 }
  0xfe   :  { %v822_v27 = vmax.f32 %v758_v17, 0.0  ;;  %v854_v28 = vmax.f32 %v790_v18, 0.0  ;;  %v689_v29 = vmul.f32 %v1457_v1, %v435_v25  ;;  %v721_v30 = vmul.f32 %v1457_v1, %v595_v26 }
  0xff   :  { %887 = vst.msk [vmem:[%s1852_s4 + $0x88] sm:$0xff] %vm82_vm1, %v823_v21  ;;  %919 = vst.msk [vmem:[%s1852_s4 + $0x188] sm:$0xff] %vm82_vm1, %v855_v22  ;;  %v761_v31 = vadd.f32 %v1462_v3, %v690_v23  ;;  %v793_v32 = vadd.f32 %v1462_v3, %v722_v24 }
 0x100   :  { %886 = vst.msk [vmem:[%s1852_s4 + $0x80] sm:$0xff] %vm82_vm1, %v822_v27  ;;  %918 = vst.msk [vmem:[%s1852_s4 + $0x180] sm:$0xff] %vm82_vm1, %v854_v28  ;;  %v760_v33 = vadd.f32 %v1462_v3, %v689_v29  ;;  %v792_v34 = vadd.f32 %v1462_v3, %v721_v30  ;;  %v1104_v35 = vpop.f32.mrb[20].mxu0  ;;  %v1152_v36 = vpop.f32.mrb[20].mxu1 }
 0x101   :  { %v825_v37 = vmax.f32 %v761_v31, 0.0  ;;  %v857_v38 = vmax.f32 %v793_v32, 0.0  ;;  %v692_v39 = vmul.f32 %v1104_v35, %v1457_v1  ;;  %v724_v40 = vmul.f32 %v1152_v36, %v1457_v1  ;;  %v445_v41 = vpop.f32.mrb[21].mxu0  ;;  %v605_v42 = vpop.f32.mrb[21].mxu1 }
 0x102   :  { %v824_v43 = vmax.f32 %v760_v33, 0.0  ;;  %v856_v44 = vmax.f32 %v792_v34, 0.0  ;;  %v691_v45 = vmul.f32 %v1457_v1, %v445_v41  ;;  %v723_v46 = vmul.f32 %v1457_v1, %v605_v42 }
 0x103   :  { %889 = vst.msk [vmem:[%s1852_s4 + $0x98] sm:$0xff] %vm82_vm1, %v825_v37  ;;  %921 = vst.msk [vmem:[%s1852_s4 + $0x198] sm:$0xff] %vm82_vm1, %v857_v38  ;;  %v763_v47 = vadd.f32 %v1462_v3, %v692_v39  ;;  %v795_v48 = vadd.f32 %v1462_v3, %v724_v40 }
 0x104   :  { %888 = vst.msk [vmem:[%s1852_s4 + $0x90] sm:$0xff] %vm82_vm1, %v824_v43  ;;  %920 = vst.msk [vmem:[%s1852_s4 + $0x190] sm:$0xff] %vm82_vm1, %v856_v44  ;;  %v762_v49 = vadd.f32 %v1462_v3, %v691_v45  ;;  %v794_v50 = vadd.f32 %v1462_v3, %v723_v46  ;;  %v1107_v51 = vpop.f32.mrb[22].mxu0  ;;  %v1155_v52 = vpop.f32.mrb[22].mxu1 }
 0x105   :  { %v827_v53 = vmax.f32 %v763_v47, 0.0  ;;  %v859_v54 = vmax.f32 %v795_v48, 0.0  ;;  %v694_v55 = vmul.f32 %v1107_v51, %v1457_v1  ;;  %v726_v56 = vmul.f32 %v1155_v52, %v1457_v1  ;;  %v455_v57 = vpop.f32.mrb[23].mxu0  ;;  %v615_v58 = vpop.f32.mrb[23].mxu1 }
 0x106   :  { %v826_v59 = vmax.f32 %v762_v49, 0.0  ;;  %v858_v60 = vmax.f32 %v794_v50, 0.0  ;;  %v693_v61 = vmul.f32 %v1457_v1, %v455_v57  ;;  %v725_v62 = vmul.f32 %v1457_v1, %v615_v58 }
 0x107   :  { %891 = vst.msk [vmem:[%s1852_s4 + $0xa8] sm:$0xff] %vm82_vm1, %v827_v53  ;;  %923 = vst.msk [vmem:[%s1852_s4 + $0x1a8] sm:$0xff] %vm82_vm1, %v859_v54  ;;  %v765_v63 = vadd.f32 %v1462_v3, %v694_v55  ;;  %v797_v0 = vadd.f32 %v1462_v3, %v726_v56 }
 0x108   :  { %890 = vst.msk [vmem:[%s1852_s4 + $0xa0] sm:$0xff] %vm82_vm1, %v826_v59  ;;  %922 = vst.msk [vmem:[%s1852_s4 + $0x1a0] sm:$0xff] %vm82_vm1, %v858_v60  ;;  %v764_v2 = vadd.f32 %v1462_v3, %v693_v61  ;;  %v796_v4 = vadd.f32 %v1462_v3, %v725_v62  ;;  %v1110_v5 = vpop.f32.mrb[24].mxu0  ;;  %v1158_v6 = vpop.f32.mrb[24].mxu1 }
 0x109   :  { %v829_v7 = vmax.f32 %v765_v63, 0.0  ;;  %v861_v8 = vmax.f32 %v797_v0, 0.0  ;;  %v696_v9 = vmul.f32 %v1110_v5, %v1457_v1  ;;  %v728_v10 = vmul.f32 %v1158_v6, %v1457_v1  ;;  %v465_v11 = vpop.f32.mrb[25].mxu0  ;;  %v625_v12 = vpop.f32.mrb[25].mxu1 }
 0x10a   :  { %v828_v13 = vmax.f32 %v764_v2, 0.0  ;;  %v860_v14 = vmax.f32 %v796_v4, 0.0  ;;  %v695_v15 = vmul.f32 %v1457_v1, %v465_v11  ;;  %v727_v16 = vmul.f32 %v1457_v1, %v625_v12 }
 0x10b   :  { %893 = vst.msk [vmem:[%s1852_s4 + $0xb8] sm:$0xff] %vm82_vm1, %v829_v7  ;;  %925 = vst.msk [vmem:[%s1852_s4 + $0x1b8] sm:$0xff] %vm82_vm1, %v861_v8  ;;  %v767_v17 = vadd.f32 %v1462_v3, %v696_v9  ;;  %v799_v18 = vadd.f32 %v1462_v3, %v728_v10 }
 0x10c   :  { %892 = vst.msk [vmem:[%s1852_s4 + $0xb0] sm:$0xff] %vm82_vm1, %v828_v13  ;;  %924 = vst.msk [vmem:[%s1852_s4 + $0x1b0] sm:$0xff] %vm82_vm1, %v860_v14  ;;  %v766_v19 = vadd.f32 %v1462_v3, %v695_v15  ;;  %v798_v20 = vadd.f32 %v1462_v3, %v727_v16  ;;  %v1113_v21 = vpop.f32.mrb[26].mxu0  ;;  %v1161_v22 = vpop.f32.mrb[26].mxu1 }
 0x10d   :  { %v831_v23 = vmax.f32 %v767_v17, 0.0  ;;  %v863_v24 = vmax.f32 %v799_v18, 0.0  ;;  %v698_v25 = vmul.f32 %v1113_v21, %v1457_v1  ;;  %v730_v26 = vmul.f32 %v1161_v22, %v1457_v1  ;;  %v475_v27 = vpop.f32.mrb[27].mxu0  ;;  %v635_v28 = vpop.f32.mrb[27].mxu1 }
 0x10e   :  { %v830_v29 = vmax.f32 %v766_v19, 0.0  ;;  %v862_v30 = vmax.f32 %v798_v20, 0.0  ;;  %v697_v31 = vmul.f32 %v1457_v1, %v475_v27  ;;  %v729_v32 = vmul.f32 %v1457_v1, %v635_v28 }
 0x10f   :  { %895 = vst.msk [vmem:[%s1852_s4 + $0xc8] sm:$0xff] %vm82_vm1, %v831_v23  ;;  %927 = vst.msk [vmem:[%s1852_s4 + $0x1c8] sm:$0xff] %vm82_vm1, %v863_v24  ;;  %v769_v33 = vadd.f32 %v1462_v3, %v698_v25  ;;  %v801_v34 = vadd.f32 %v1462_v3, %v730_v26 }
 0x110   :  { %894 = vst.msk [vmem:[%s1852_s4 + $0xc0] sm:$0xff] %vm82_vm1, %v830_v29  ;;  %926 = vst.msk [vmem:[%s1852_s4 + $0x1c0] sm:$0xff] %vm82_vm1, %v862_v30  ;;  %v768_v35 = vadd.f32 %v1462_v3, %v697_v31  ;;  %v800_v36 = vadd.f32 %v1462_v3, %v729_v32  ;;  %v1116_v37 = vpop.f32.mrb[28].mxu0  ;;  %v1164_v38 = vpop.f32.mrb[28].mxu1 }
 0x111   :  { %v833_v39 = vmax.f32 %v769_v33, 0.0  ;;  %v865_v40 = vmax.f32 %v801_v34, 0.0  ;;  %v700_v41 = vmul.f32 %v1116_v37, %v1457_v1  ;;  %v732_v42 = vmul.f32 %v1164_v38, %v1457_v1  ;;  %v485_v43 = vpop.f32.mrb[29].mxu0  ;;  %v645_v44 = vpop.f32.mrb[29].mxu1 }
 0x112   :  { %v832_v45 = vmax.f32 %v768_v35, 0.0  ;;  %v864_v46 = vmax.f32 %v800_v36, 0.0  ;;  %v699_v47 = vmul.f32 %v1457_v1, %v485_v43  ;;  %v731_v48 = vmul.f32 %v1457_v1, %v645_v44 }
 0x113   :  { %897 = vst.msk [vmem:[%s1852_s4 + $0xd8] sm:$0xff] %vm82_vm1, %v833_v39  ;;  %929 = vst.msk [vmem:[%s1852_s4 + $0x1d8] sm:$0xff] %vm82_vm1, %v865_v40  ;;  %v771_v49 = vadd.f32 %v1462_v3, %v700_v41  ;;  %v803_v50 = vadd.f32 %v1462_v3, %v732_v42 }
 0x114   :  { %896 = vst.msk [vmem:[%s1852_s4 + $0xd0] sm:$0xff] %vm82_vm1, %v832_v45  ;;  %928 = vst.msk [vmem:[%s1852_s4 + $0x1d0] sm:$0xff] %vm82_vm1, %v864_v46  ;;  %v770_v51 = vadd.f32 %v1462_v3, %v699_v47  ;;  %v802_v52 = vadd.f32 %v1462_v3, %v731_v48  ;;  %v1119_v53 = vpop.f32.mrb[30].mxu0  ;;  %v1167_v54 = vpop.f32.mrb[30].mxu1 }
 0x115   :  { %v835_v55 = vmax.f32 %v771_v49, 0.0  ;;  %v867_v56 = vmax.f32 %v803_v50, 0.0  ;;  %v702_v57 = vmul.f32 %v1119_v53, %v1457_v1  ;;  %v734_v58 = vmul.f32 %v1167_v54, %v1457_v1  ;;  %v495_v59 = vpop.f32.mrb[31].mxu0  ;;  %v655_v60 = vpop.f32.mrb[31].mxu1 }
 0x116   :  { %v834_v61 = vmax.f32 %v770_v51, 0.0  ;;  %v866_v62 = vmax.f32 %v802_v52, 0.0  ;;  %v701_v63 = vmul.f32 %v1457_v1, %v495_v59  ;;  %v733_v0 = vmul.f32 %v1457_v1, %v655_v60 }
 0x117   :  { %899 = vst.msk [vmem:[%s1852_s4 + $0xe8] sm:$0xff] %vm82_vm1, %v835_v55  ;;  %931 = vst.msk [vmem:[%s1852_s4 + $0x1e8] sm:$0xff] %vm82_vm1, %v867_v56  ;;  %v773_v2 = vadd.f32 %v1462_v3, %v702_v57  ;;  %v805_v4 = vadd.f32 %v1462_v3, %v734_v58 }
 0x118   :  { %898 = vst.msk [vmem:[%s1852_s4 + $0xe0] sm:$0xff] %vm82_vm1, %v834_v61  ;;  %930 = vst.msk [vmem:[%s1852_s4 + $0x1e0] sm:$0xff] %vm82_vm1, %v866_v62  ;;  %v772_v1 = vadd.f32 %v1462_v3, %v701_v63  ;;  %v804_v5 = vadd.f32 %v1462_v3, %v733_v0 }
 0x119   :  { %v837_v6 = vmax.f32 %v773_v2, 0.0  ;;  %v869_v7 = vmax.f32 %v805_v4, 0.0 }
 0x11a   :  { %v836_v8 = vmax.f32 %v772_v1, 0.0  ;;  %v868_v9 = vmax.f32 %v804_v5, 0.0 }
 0x11b   :  { %901 = vst.msk [vmem:[%s1852_s4 + $0xf8] sm:$0xff] %vm82_vm1, %v837_v6  ;;  %933 = vst.msk [vmem:[%s1852_s4 + $0x1f8] sm:$0xff] %vm82_vm1, %v869_v7 }
 0x11c   :  { %900 = vst.msk [vmem:[%s1852_s4 + $0xf0] sm:$0xff] %vm82_vm1, %v836_v8  ;;  %932 = vst.msk [vmem:[%s1852_s4 + $0x1f0] sm:$0xff] %vm82_vm1, %v868_v9 }

</bundles_post_ra>
